<compile_context>
chip_gen: v7x
topology: tpu7x:2x2x1
jax: 0.10.0
libtpu: 0.0.40
codegen_flags: <defaults>
</compile_context>

<pallas_src>
import functools
import math

import jax
import jax.numpy as jnp
from jax.experimental import pallas as pl
from jax.experimental.pallas import tpu as pltpu

LOG_STD_MIN = -20.0
LOG_STD_MAX = 2.0
_A = 0.5 * (LOG_STD_MAX - LOG_STD_MIN)          # log_std = _A * tanh(.) + _C
_C = LOG_STD_MIN + _A
_HALF_LOG_2PI = 0.5 * math.log(2.0 * math.pi)


def _round_up(x, m):
    return (x + m - 1) // m * m


def actor_kernel(x_ref, w_ref, b_ref, eps_ref, action_ref, logp_ref, *, out_dim):
    # x_ref:   (TB, P)   f32   state, feature-padded to P
    # w_ref:   (3, P, P) bf16  [layer1, layer2, fused mu||log_std head]
    # b_ref:   (3, P)    f32   matching biases (zero padded)
    # eps_ref: (TB, out) f32   N(0,1) noise for rsample
    x = x_ref[...].astype(jnp.bfloat16)

    # Hidden MLP: Linear -> ReLU -> Linear -> ReLU (bf16 MXU, f32 accumulate)
    h = jnp.dot(x, w_ref[0], preferred_element_type=jnp.float32)
    h = jnp.maximum(h + b_ref[0:1, :], 0.0)
    h = jnp.dot(h.astype(jnp.bfloat16), w_ref[1], preferred_element_type=jnp.float32)
    h = jnp.maximum(h + b_ref[1:2, :], 0.0)

    # Fused heads: single matmul produces [mu | log_std] columns.
    heads = jnp.dot(h.astype(jnp.bfloat16), w_ref[2], preferred_element_type=jnp.float32)
    heads = jnp.tanh(heads + b_ref[2:3, :])

    mu = heads[:, :out_dim]
    log_std = _A * heads[:, out_dim:2 * out_dim] + _C
    std = jnp.exp(log_std)

    # rsample: z = mu + std * eps
    eps = eps_ref[...]
    z = mu + std * eps
    action = jnp.tanh(z)

    # Normal(mu, std).log_prob(z): (z - mu)/std == eps by construction.
    normal_logp = -0.5 * jnp.square(eps) - log_std - _HALF_LOG_2PI
    logp_el = normal_logp - jnp.log(1.0 - jnp.square(action) + 1e-7)

    action_ref[...] = action
    logp_ref[...] = jnp.sum(logp_el, axis=-1, keepdims=True)


def actor_forward(state, w_slab, b_slab, eps, *, batch_tile=256):
    """state: (B, in_dim) f32; eps: (B, out_dim) f32; slabs from pack_params."""
    B, in_dim = state.shape
    out_dim = eps.shape[-1]
    P = w_slab.shape[-1]

    # Batch tile: multiple of 8 sublanes; large tiles amortize per-step overhead.
    TB = batch_tile if B >= batch_tile else _round_up(B, 8)
    Bp = _round_up(B, TB)

    # Pad features to P and batch to a multiple of the tile.
    xp = jnp.zeros((Bp, P), jnp.float32).at[:B, :in_dim].set(state)
    eps_p = eps if Bp == B else jnp.zeros((Bp, out_dim), jnp.float32).at[:B].set(eps)

    kernel = functools.partial(actor_kernel, out_dim=out_dim)

    action, log_prob = pl.pallas_call(
        kernel,
        out_shape=(
            jax.ShapeDtypeStruct((Bp, out_dim), jnp.float32),
            jax.ShapeDtypeStruct((Bp, 1), jnp.float32),
        ),
        grid=(Bp // TB,),
        in_specs=[
            pl.BlockSpec((TB, P), lambda i: (i, 0)),          # state tile
            pl.BlockSpec((3, P, P), lambda i: (0, 0, 0)),     # weights (resident)
            pl.BlockSpec((3, P), lambda i: (0, 0)),           # biases  (resident)
            pl.BlockSpec((TB, out_dim), lambda i: (i, 0)),    # eps tile
        ],
        out_specs=(
            pl.BlockSpec((TB, out_dim), lambda i: (i, 0)),
            pl.BlockSpec((TB, 1), lambda i: (i, 0)),
        ),
        compiler_params=pltpu.CompilerParams(
            dimension_semantics=("parallel",),                # shard batch on v7x TCs
        ),
    )(xp, w_slab, b_slab, eps_p)

    return action[:B], log_prob[:B]


def init_params(key, in_dim, h1, h2, out_dim):
    """nn.Linear default init for hidden layers + init_layer_uniform(0.003) heads."""
    ks = jax.random.split(key, 8)

    def linear_init(kw, kb, fan_in, fan_out):
        bound = 1.0 / math.sqrt(fan_in)
        w = jax.random.uniform(kw, (fan_in, fan_out), jnp.float32, -bound, bound)
        b = jax.random.uniform(kb, (fan_out,), jnp.float32, -bound, bound)
        return w, b

    def head_init(kw, kb, fan_in, fan_out, init_w=0.003):
        w = jax.random.uniform(kw, (fan_in, fan_out), jnp.float32, -init_w, init_w)
        b = jax.random.uniform(kb, (fan_out,), jnp.float32, -init_w, init_w)
        return w, b

    w1, b1 = linear_init(ks[0], ks[1], in_dim, h1)
    w2, b2 = linear_init(ks[2], ks[3], h1, h2)
    wmu, bmu = head_init(ks[4], ks[5], h2, out_dim)
    wls, bls = head_init(ks[6], ks[7], h2, out_dim)
    return {"w1": w1, "b1": b1, "w2": w2, "b2": b2,
            "wmu": wmu, "bmu": bmu, "wls": wls, "bls": bls}


def pack_params(params, in_dim, h1, h2, out_dim):
    """Pack all layers into one bf16 weight slab and one f32 bias slab.

    Features are zero-padded to a common width P so every layer is a (P, P)
    matmul; the zero padding is inert (0-weights, 0-bias, ReLU(0)=0) and the
    head result is sliced to [mu | log_std] inside the kernel.
    """
    P = _round_up(max(in_dim, h1, h2, 2 * out_dim), 8)
    w = jnp.zeros((3, P, P), jnp.float32)
    w = w.at[0, :in_dim, :h1].set(params["w1"])
    w = w.at[1, :h1, :h2].set(params["w2"])
    w = w.at[2, :h2, :out_dim].set(params["wmu"])
    w = w.at[2, :h2, out_dim:2 * out_dim].set(params["wls"])

    b = jnp.zeros((3, P), jnp.float32)
    b = b.at[0, :h1].set(params["b1"])
    b = b.at[1, :h2].set(params["b2"])
    b = b.at[2, :out_dim].set(params["bmu"])
    b = b.at[2, out_dim:2 * out_dim].set(params["bls"])
    return w.astype(jnp.bfloat16), b


if __name__ == "__main__":
    # Actor(in_dim=16, out_dim=8, layers_data=[(32, ReLU), (32, ReLU)]), batch 8.
    B, IN_DIM, H1, H2, OUT_DIM = 8, 16, 32, 32, 8

    key = jax.random.PRNGKey(0)
    k_params, k_state, k_eps = jax.random.split(key, 3)

    params = init_params(k_params, IN_DIM, H1, H2, OUT_DIM)
    w_slab, b_slab = pack_params(params, IN_DIM, H1, H2, OUT_DIM)

    state = jax.random.normal(k_state, (B, IN_DIM), jnp.float32)
    eps = jax.random.normal(k_eps, (B, OUT_DIM), jnp.float32)  # rsample noise

    action, log_prob = actor_forward(state, w_slab, b_slab, eps)
    jax.block_until_ready((action, log_prob))

    assert action.shape == (B, OUT_DIM)
    assert log_prob.shape == (B, 1)
    assert bool(jnp.all(jnp.isfinite(action))) and bool(jnp.all(jnp.isfinite(log_prob)))
    assert bool(jnp.all(jnp.abs(action) <= 1.0))
    print("KERNEL_OK")
</pallas_src>

<mosaic_0001>
module attributes {stable_mosaic.version = 11 : i64} {
  func.func @actor_kernel(%arg0: i32, %arg1: memref<8x32xf32, #tpu.memory_space<vmem>>, %arg2: memref<3x32x32xbf16, #tpu.memory_space<vmem>>, %arg3: memref<3x32xf32, #tpu.memory_space<vmem>>, %arg4: memref<8x8xf32, #tpu.memory_space<vmem>>, %arg5: memref<8x8xf32, #tpu.memory_space<vmem>>, %arg6: memref<8x1xf32, #tpu.memory_space<vmem>>) attributes {dimension_semantics = [#tpu.dimension_semantics<parallel>], iteration_bounds = array<i64: 1>, scalar_prefetch = 0 : i64, scratch_operands = 0 : i64, tpu.core_type = #tpu.core_type<tc>, window_params = [{transform_indices = @transform_0, window_bounds = array<i64: 8, 32>}, {pipeline_mode = #tpu.pipeline_mode<synchronous>, transform_indices = @transform_1, window_bounds = array<i64: 3, 32, 32>}, {pipeline_mode = #tpu.pipeline_mode<synchronous>, transform_indices = @transform_2, window_bounds = array<i64: 3, 32>}, {transform_indices = @transform_3, window_bounds = array<i64: 8, 8>}, {transform_indices = @transform_4, window_bounds = array<i64: 8, 8>}, {transform_indices = @transform_5, window_bounds = array<i64: 8, 1>}]} {
    %c0 = arith.constant 0 : index
    %c0_0 = arith.constant 0 : index
    %0 = vector.load %arg1[%c0, %c0_0] : memref<8x32xf32, #tpu.memory_space<vmem>>, vector<8x32xf32>
    %1 = arith.truncf %0 : vector<8x32xf32> to vector<8x32xbf16>
    %c0_1 = arith.constant 0 : index
    %c0_2 = arith.constant 0 : index
    %c0_3 = arith.constant 0 : index
    %2 = vector.load %arg2[%c0_1, %c0_2, %c0_3] : memref<3x32x32xbf16, #tpu.memory_space<vmem>>, vector<1x32x32xbf16>
    %3 = vector.shape_cast %2 : vector<1x32x32xbf16> to vector<32x32xbf16>
    %cst = arith.constant dense<0.000000e+00> : vector<8x32xf32>
    %4 = tpu.matmul %1, %3, %cst {dimension_numbers = #tpu.dot_dimension_numbers<[1], [0], [0], [1], [0, 0, 1, 1], [], []>} : vector<8x32xbf16>, vector<32x32xbf16>, vector<8x32xf32> -> vector<8x32xf32>
    %c0_4 = arith.constant 0 : index
    %c0_5 = arith.constant 0 : index
    %5 = vector.load %arg3[%c0_4, %c0_5] : memref<3x32xf32, #tpu.memory_space<vmem>>, vector<1x32xf32>
    %6 = vector.broadcast %5 : vector<1x32xf32> to vector<8x32xf32>
    %7 = arith.addf %4, %6 : vector<8x32xf32>
    %cst_6 = arith.constant 0.000000e+00 : f32
    %8 = vector.broadcast %cst_6 : f32 to vector<8x32xf32>
    %9 = arith.maximumf %7, %8 : vector<8x32xf32>
    %10 = arith.truncf %9 : vector<8x32xf32> to vector<8x32xbf16>
    %c1 = arith.constant 1 : index
    %c0_7 = arith.constant 0 : index
    %c0_8 = arith.constant 0 : index
    %11 = vector.load %arg2[%c1, %c0_7, %c0_8] : memref<3x32x32xbf16, #tpu.memory_space<vmem>>, vector<1x32x32xbf16>
    %12 = vector.shape_cast %11 : vector<1x32x32xbf16> to vector<32x32xbf16>
    %cst_9 = arith.constant dense<0.000000e+00> : vector<8x32xf32>
    %13 = tpu.matmul %10, %12, %cst_9 {dimension_numbers = #tpu.dot_dimension_numbers<[1], [0], [0], [1], [0, 0, 1, 1], [], []>} : vector<8x32xbf16>, vector<32x32xbf16>, vector<8x32xf32> -> vector<8x32xf32>
    %c1_10 = arith.constant 1 : index
    %c0_11 = arith.constant 0 : index
    %14 = vector.load %arg3[%c1_10, %c0_11] : memref<3x32xf32, #tpu.memory_space<vmem>>, vector<1x32xf32>
    %15 = vector.broadcast %14 : vector<1x32xf32> to vector<8x32xf32>
    %16 = arith.addf %13, %15 : vector<8x32xf32>
    %cst_12 = arith.constant 0.000000e+00 : f32
    %17 = vector.broadcast %cst_12 : f32 to vector<8x32xf32>
    %18 = arith.maximumf %16, %17 : vector<8x32xf32>
    %19 = arith.truncf %18 : vector<8x32xf32> to vector<8x32xbf16>
    %c2 = arith.constant 2 : index
    %c0_13 = arith.constant 0 : index
    %c0_14 = arith.constant 0 : index
    %20 = vector.load %arg2[%c2, %c0_13, %c0_14] : memref<3x32x32xbf16, #tpu.memory_space<vmem>>, vector<1x32x32xbf16>
    %21 = vector.shape_cast %20 : vector<1x32x32xbf16> to vector<32x32xbf16>
    %cst_15 = arith.constant dense<0.000000e+00> : vector<8x32xf32>
    %22 = tpu.matmul %19, %21, %cst_15 {dimension_numbers = #tpu.dot_dimension_numbers<[1], [0], [0], [1], [0, 0, 1, 1], [], []>} : vector<8x32xbf16>, vector<32x32xbf16>, vector<8x32xf32> -> vector<8x32xf32>
    %c2_16 = arith.constant 2 : index
    %c0_17 = arith.constant 0 : index
    %23 = vector.load %arg3[%c2_16, %c0_17] : memref<3x32xf32, #tpu.memory_space<vmem>>, vector<1x32xf32>
    %24 = vector.broadcast %23 : vector<1x32xf32> to vector<8x32xf32>
    %25 = arith.addf %22, %24 : vector<8x32xf32>
    %26 = math.tanh %25 : vector<8x32xf32>
    %27 = vector.extract_strided_slice %26 {offsets = [0, 0], sizes = [8, 8], strides = [1, 1]} : vector<8x32xf32> to vector<8x8xf32>
    %28 = vector.extract_strided_slice %26 {offsets = [0, 8], sizes = [8, 8], strides = [1, 1]} : vector<8x32xf32> to vector<8x8xf32>
    %cst_18 = arith.constant 1.100000e+01 : f32
    %29 = vector.broadcast %cst_18 : f32 to vector<8x8xf32>
    %30 = arith.mulf %29, %28 : vector<8x8xf32>
    %cst_19 = arith.constant -9.000000e+00 : f32
    %31 = vector.broadcast %cst_19 : f32 to vector<8x8xf32>
    %32 = arith.addf %30, %31 : vector<8x8xf32>
    %33 = math.exp %32 : vector<8x8xf32>
    %c0_20 = arith.constant 0 : index
    %c0_21 = arith.constant 0 : index
    %34 = vector.load %arg4[%c0_20, %c0_21] : memref<8x8xf32, #tpu.memory_space<vmem>>, vector<8x8xf32>
    %35 = arith.mulf %33, %34 : vector<8x8xf32>
    %36 = arith.addf %27, %35 : vector<8x8xf32>
    %37 = math.tanh %36 : vector<8x8xf32>
    %38 = arith.mulf %34, %34 : vector<8x8xf32>
    %cst_22 = arith.constant -5.000000e-01 : f32
    %39 = vector.broadcast %cst_22 : f32 to vector<8x8xf32>
    %40 = arith.mulf %39, %38 : vector<8x8xf32>
    %41 = arith.subf %40, %32 : vector<8x8xf32>
    %cst_23 = arith.constant 0.918938517 : f32
    %42 = vector.broadcast %cst_23 : f32 to vector<8x8xf32>
    %43 = arith.subf %41, %42 : vector<8x8xf32>
    %44 = arith.mulf %37, %37 : vector<8x8xf32>
    %cst_24 = arith.constant 1.000000e+00 : f32
    %45 = vector.broadcast %cst_24 : f32 to vector<8x8xf32>
    %46 = arith.subf %45, %44 : vector<8x8xf32>
    %cst_25 = arith.constant 1.000000e-07 : f32
    %47 = vector.broadcast %cst_25 : f32 to vector<8x8xf32>
    %48 = arith.addf %46, %47 : vector<8x8xf32>
    %49 = math.log %48 : vector<8x8xf32>
    %50 = arith.subf %43, %49 : vector<8x8xf32>
    %c0_26 = arith.constant 0 : index
    %c0_27 = arith.constant 0 : index
    %51 = vector.load %arg5[%c0_26, %c0_27] : memref<8x8xf32, #tpu.memory_space<vmem>>, vector<8x8xf32>
    tpu.vector_store %arg5[%c0_26, %c0_27], %37 {strides = array<i32>} : memref<8x8xf32, #tpu.memory_space<vmem>>, vector<8x8xf32>,
    %cst_28 = arith.constant dense<0.000000e+00> : vector<8xf32>
    %52 = vector.multi_reduction <add>, %50, %cst_28 [1] : vector<8x8xf32> to vector<8xf32>
    %53 = vector.shape_cast %52 : vector<8xf32> to vector<8x1xf32>
    %c0_29 = arith.constant 0 : index
    %c0_30 = arith.constant 0 : index
    %54 = vector.load %arg6[%c0_29, %c0_30] : memref<8x1xf32, #tpu.memory_space<vmem>>, vector<8x1xf32>
    tpu.vector_store %arg6[%c0_29, %c0_30], %53 {strides = array<i32>} : memref<8x1xf32, #tpu.memory_space<vmem>>, vector<8x1xf32>,
    return
  }
  func.func @transform_0(%arg0: i32) -> (i32, i32) {
    %c0_i32 = arith.constant 0 : i32
    %c0_i32_0 = arith.constant 0 : i32
    return %arg0, %c0_i32 : i32, i32
  }
  func.func @transform_1(%arg0: i32) -> (i32, i32, i32) {
    %c0_i32 = arith.constant 0 : i32
    %c0_i32_0 = arith.constant 0 : i32
    %c0_i32_1 = arith.constant 0 : i32
    %c0_i32_2 = arith.constant 0 : i32
    return %c0_i32, %c0_i32_0, %c0_i32_1 : i32, i32, i32
  }
  func.func @transform_2(%arg0: i32) -> (i32, i32) {
    %c0_i32 = arith.constant 0 : i32
    %c0_i32_0 = arith.constant 0 : i32
    %c0_i32_1 = arith.constant 0 : i32
    return %c0_i32, %c0_i32_0 : i32, i32
  }
  func.func @transform_3(%arg0: i32) -> (i32, i32) {
    %c0_i32 = arith.constant 0 : i32
    %c0_i32_0 = arith.constant 0 : i32
    return %arg0, %c0_i32 : i32, i32
  }
  func.func @transform_4(%arg0: i32) -> (i32, i32) {
    %c0_i32 = arith.constant 0 : i32
    %c0_i32_0 = arith.constant 0 : i32
    return %arg0, %c0_i32 : i32, i32
  }
  func.func @transform_5(%arg0: i32) -> (i32, i32) {
    %c0_i32 = arith.constant 0 : i32
    %c0_i32_0 = arith.constant 0 : i32
    return %arg0, %c0_i32 : i32, i32
  }
}

</mosaic_0001>

<bundles_post_ra>
// kernel: tpu_custom_call.1
= control target key start
LH: loop header
LB: loop body
LE: loop exit
PB: predicated region body
PF: predicated region fallthrough
CT: control target
= control target key end

     0   :  { %11 = vsyncpa [#allocation3], 0  ;;  %s578_s0 = inlined_call_operand.hbm [shape: f32[8,32], index: 0, kind: input, shape index: {}]   ;;  %s579_s1 = inlined_call_operand.hbm [shape: bf16[3,32,32], index: 1, kind: input, shape index: {}]   ;;  %s580_s2 = inlined_call_operand.hbm [shape: f32[3,32], index: 2, kind: input, shape index: {}]   ;;  %s581_s3 = inlined_call_operand.vmem [shape: f32[8,8], index: 3, kind: input, shape index: {}]   ;;  %s582_s4 = inlined_call_operand.hbm [shape: f32[8,8], index: 4, kind: output, shape index: {0}]   ;;  %s583_s5 = inlined_call_operand.vmem [shape: f32[8,1], index: 5, kind: output, shape index: {1}]  }
   0x1   :  { %12 = vsyncpa [#allocation6], 0 }
   0x2   :  { %13 = vsyncpa [#allocation4], 0  ;;  %s481_s18 = smov [#allocation5]   ;;  %s387_s22 = scalar_lea.hbm %s579_s1, 768 }
   0x3   :  { %s29_s19 = sshll.u32 %s481_s18, 4  ;;  %p388_p0 = scmp.ne.s32.totalorder %s579_s1, %s387_s22  ;;  %s30_s19 = int_to_ptr.vmem [resolvable:$true] %s29_s19 }
   0x4   :  { %p391_p1 = scmp.lt.u32.totalorder %s387_s22, %s579_s1 }
   0x6   :  { %p393_p2 = pnand %p391_p1, %p388_p0 }
   0x8   :  { %396 = shalt.err (!%p393_p2)
}
   0x9   :  { %s397_s27 = scalar_lea.vmem %s30_s19, 768  ;;  %p402_p4 = scmp.lt.s32.totalorder %s30_s19, %s30_s19 }
   0xa   :  { %p398_p3 = scmp.ne.s32.totalorder %s30_s19, %s397_s27  ;;  %p403_p5 = scmp.lt.s32.totalorder %s397_s27, %s397_s27 }
   0xc   :  { %p404_p6 = por %p403_p5, %p402_p4 }
   0xe   :  { %p405_p7 = pnand %p404_p6, %p398_p3 }
  0x10   :  { %408 = shalt.err (!%p405_p7)
}
  0x11   :  { %s482_s28 = smov 64   ;;  %s483_s29 = smov 4  }
  0x12   :  { %35 = dma.hbm_to_vmem [thread:$0]  %s579_s1, 768, %s30_s19, [#allocation6], %s482_s28, %s482_s28, %s483_s29  }
  0x13   :  { %s484_s7 = smov [#allocation2]   ;;  %s485_s9 = smov [#allocation7]  }
  0x14   :  { %s20_s8 = sshll.u32 %s484_s7, 4  ;;  %s42_s10 = sshll.u32 %s485_s9, 4  ;;  %s21_s8 = int_to_ptr.vmem [resolvable:$true] %s20_s8  ;;  %s43_s10 = int_to_ptr.vmem [resolvable:$true] %s42_s10 }
  0x15   :  { %s409_s13 = scalar_lea.hbm %s578_s0, 128 }
  0x16   :  { %p410_p8 = scmp.ne.s32.totalorder %s578_s0, %s409_s13  ;;  %p413_p9 = scmp.lt.u32.totalorder %s409_s13, %s578_s0 }
  0x18   :  { %p415_p10 = pnand %p413_p9, %p410_p8 }
  0x1a   :  { %418 = shalt.err (!%p415_p10)
}
  0x1b   :  { %s419_s1 = scalar_lea.vmem %s21_s8, 128  ;;  %p424_p12 = scmp.lt.s32.totalorder %s21_s8, %s21_s8 }
  0x1c   :  { %p420_p11 = scmp.ne.s32.totalorder %s21_s8, %s419_s1  ;;  %p425_p13 = scmp.lt.s32.totalorder %s419_s1, %s419_s1 }
  0x1e   :  { %p426_p0 = por %p425_p13, %p424_p12 }
  0x20   :  { %p427_p1 = pnand %p426_p0, %p420_p11 }
  0x22   :  { %430 = shalt.err (!%p427_p1)
}
  0x23   :  { %23 = dma.hbm_to_vmem [thread:$0]  %s578_s0, 128, %s21_s8, [#allocation3]  }
  0x24   :  { %s431_s22 = scalar_lea.hbm %s580_s2, 64 }
  0x25   :  { %p432_p2 = scmp.ne.s32.totalorder %s580_s2, %s431_s22  ;;  %p435_p3 = scmp.lt.u32.totalorder %s431_s22, %s580_s2 }
  0x27   :  { %p437_p4 = pnand %p435_p3, %p432_p2 }
  0x29   :  { %440 = shalt.err (!%p437_p4)
}
  0x2a   :  { %s441_s27 = scalar_lea.vmem %s43_s10, 64  ;;  %p446_p6 = scmp.lt.s32.totalorder %s43_s10, %s43_s10 }
  0x2b   :  { %p442_p5 = scmp.ne.s32.totalorder %s43_s10, %s441_s27  ;;  %p447_p7 = scmp.lt.s32.totalorder %s441_s27, %s441_s27 }
  0x2d   :  { %p448_p8 = por %p447_p7, %p446_p6 }
  0x2f   :  { %p449_p9 = pnand %p448_p8, %p442_p5 }
  0x31   :  { %452 = shalt.err (!%p449_p9)
}
  0x32   :  { %45 = dma.hbm_to_vmem [thread:$0]  %s580_s2, 64, %s43_s10, [#allocation6]  }
  0x33   :  { %475 = dma.done.wait [#allocation3], 128  }
  0x34   :  { %476 = vsyncadd [#allocation3], 4294967168 }
  0x35   :  { %477 = dma.done.wait [#allocation6], 832  }
  0x36   :  { %478 = vsyncadd [#allocation6], 4294966464  ;;  %v486_v0 = vmov 0.0   ;;  %vm487_vm0 = vmmov 0   ;;  %v373_v1 = vld [vmem:[#allocation5] sm:$0xff]   ;;  %v374_v2 = vld [vmem:[#allocation5 + $0x8] sm:$0xff]  }
  0x37   :  { %339 = vmatprep.subr.bf16.mxu0 %v486_v0  ;;  %343 = vmatprep.mubr.msk.bf16.mxu0 %vm487_vm0, %v486_v0  ;;  %v58_v3 = vld [vmem:[#allocation2] sm:$0xff]  ;;  %vm81_vm1 = vcmask 261120   ;;  %v375_v5 = vld [vmem:[#allocation5 + $0x10] sm:$0xff]   ;;  %v377_v7 = vld [vmem:[#allocation5 + $0x20] sm:$0xff]   ;;  %s488_s30 = smov 8   ;;  %vm290_vm2 = vcmask 64512  }
  0x38   :  { %347 = vmatprep.subr.bf16.mxu1 %v486_v0  ;;  %351 = vmatprep.mubr.msk.bf16.mxu1 %vm487_vm0, %v486_v0  ;;  %v59_v4 = vpack.c.bf16 %v58_v3, %v58_v3  ;;  %v376_v6 = vld [vmem:[#allocation5 + $0x18] sm:$0xff]   ;;  %v317_v8 = vld [vmem:[#allocation7] ss:$0 sm:$0xff]  ;;  %v378_v16 = vld [vmem:[#allocation5 + $0x28] sm:$0xff]   ;;  %s490_s6 = smov [#allocation8]  }
  0x39   :  { %340 = vmatpush3.bf16.msra.mxu0 %v373_v1  ;;  %348 = vmatpush3.bf16.msra.mxu1 %v375_v5  ;;  %v264_v17 = vld [vmem:[%s581_s3] sm:$0xff]  ;;  %v321_v18 = vld [vmem:[#allocation7 + $0x1] ss:$0 sm:$0xff]  ;;  %v325_v26 = vld [vmem:[#allocation7 + $0x2] ss:$0 sm:$0xff]  ;;  %s489_s3 = smov 120  }
  0x3a   :  { %341 = vmatprep.subr.bf16.mxu0 %v486_v0  ;;  %349 = vmatprep.subr.bf16.mxu1 %v486_v0  ;;  %v276_v45 = vmul.f32 %v264_v17, %v264_v17  ;;  %s303_s7 = sshll.u32 %s490_s6, 4  ;;  %s304_s7 = int_to_ptr.vmem [resolvable:$true] %s303_s7 }
  0x3b   :  { %266 = vrot.lane.b32.xlu0 %v264_v17, %s488_s30  ;;  %s453_s8 = scalar_lea.vmem %s304_s7, 128  ;;  %p458_p11 = scmp.lt.s32.totalorder %s304_s7, %s304_s7 }
  0x3c   :  { %v277_v46 = vmul.f32 -0.5, %v276_v45  ;;  %p454_p10 = scmp.ne.s32.totalorder %s304_s7, %s453_s8  ;;  %p459_p12 = scmp.lt.s32.totalorder %s453_s8, %s453_s8 }
  0x3d   :  { %342 = vmatpush3.bf16.msra.mxu0 %v374_v2  ;;  %350 = vmatpush3.bf16.msra.mxu1 %v376_v6 }
  0x3e   :  { %355 = vmatprep.subr.bf16.mxu0 %v486_v0  ;;  %p460_p13 = por %p459_p12, %p458_p11 }
  0x40   :  { %344 = vmatmul.mubr.msk.bf16.vlgmr.msra.gmra.mrb[0].mxu0 %vm81_vm1, %v59_v4  ;;  %p461_p0 = pnand %p460_p13, %p454_p10 }
  0x41   :  { %359 = vmatprep.mubr.msk.bf16.mxu0 %vm487_vm0, %v486_v0  ;;  %356 = vmatpush3.bf16.msra.mxu0 %v377_v7 }
  0x42   :  { %357 = vmatprep.subr.bf16.mxu0 %v486_v0 }
  0x45   :  { %358 = vmatpush3.bf16.msra.mxu0 %v378_v16 }
  0xad   :  { %v267_v36 = vpop.permute.xlu0 %266 }
 0x113   :  { %v119_v9 = vpop.f32.mrb[0].mxu0 }
 0x114   :  { %v120_v10 = vadd.f32 %v317_v8, %v119_v9  ;;  %v345_v11 = vpop.f32.mrb[1].mxu0 }
 0x115   :  { %v122_v12 = vpop.f32.mrb[2].mxu0 }
 0x116   :  { %v125_v13 = vmax.f32 %v120_v10, 0.0  ;;  %v346_v14 = vpop.f32.mrb[3].mxu0 }
 0x118   :  { %v126_v15 = vpack.c.bf16 %v125_v13, %v125_v13 }
 0x11a   :  { %352 = vmatmul.mubr.msk.bf16.vlgmr.msra.gmra.mrb[0].mxu1 %vm81_vm1, %v126_v15 }
 0x1ed   :  { %v186_v19 = vpop.f32.mrb[0].mxu1 }
 0x1ee   :  { %v187_v20 = vadd.f32 %v321_v18, %v186_v19  ;;  %v353_v21 = vpop.f32.mrb[1].mxu1 }
 0x1ef   :  { %v189_v22 = vpop.f32.mrb[2].mxu1 }
 0x1f0   :  { %v192_v23 = vmax.f32 %v187_v20, 0.0  ;;  %v354_v24 = vpop.f32.mrb[3].mxu1 }
 0x1f2   :  { %v193_v25 = vpack.c.bf16 %v192_v23, %v192_v23 }
 0x1f4   :  { %360 = vmatmul.mubr.msk.bf16.vlgmr.msra.gmra.mrb[4].mxu0 %vm81_vm1, %v193_v25 }
 0x2c7   :  { %v253_v27 = vpop.f32.mrb[4].mxu0 }
 0x2c8   :  { %v254_v28 = vadd.f32 %v325_v26, %v253_v27  ;;  %v361_v29 = vpop.f32.mrb[5].mxu0 }
 0x2c9   :  { %v256_v30 = vpop.f32.mrb[6].mxu0 }
 0x2ca   :  { %379 = vtanh.f32 %v254_v28  ;;  %v362_v31 = vpop.f32.mrb[7].mxu0 }
 0x2d4   :  { %v380_v32 = vpop.eup %379 }
 0x2d5   :  { %v260_v33 = vmul.f32 11.0, %v380_v32 }
 0x2d7   :  { %v261_v34 = vadd.f32 -9.0, %v260_v33 }
 0x2d9   :  { %279 = vrot.lane.b32.xlu1 %v261_v34, %s489_s3  ;;  %v262_v35 = vmul.f32 1.442695, %v261_v34 }
 0x2db   :  { %381 = vpow2.f32 %v262_v35 }
 0x2e5   :  { %v382_v37 = vpop.eup %381 }
 0x2e6   :  { %v269_v38 = vmul.f32 %v382_v37, %v267_v36 }
 0x2e8   :  { %271 = vrot.lane.b32.xlu0 %v269_v38, %s489_s3 }
 0x34b   :  { %v280_v47 = vpop.permute.xlu1 %279 }
 0x34c   :  { %v282_v48 = vsub.f32 %v277_v46, %v280_v47 }
 0x34e   :  { %v329_v50 = vadd.f32 -0.9189385, %v282_v48 }
 0x35a   :  { %v272_v39 = vpop.permute.xlu0 %271 }
 0x35b   :  { %v274_v40 = vadd.f32 %v380_v32, %v272_v39 }
 0x35d   :  { %383 = vtanh.f32 %v274_v40 }
 0x367   :  { %v384_v41 = vpop.eup %383 }
 0x368   :  { %v284_v42 = vmul.f32 %v384_v41, %v384_v41  ;;  %291 = vst.msk [vmem:[#allocation8] sm:$0xff] %vm290_vm2, %v384_v41 }
 0x36a   :  { %v285_v43 = vsub.f32 1.0, %v284_v42 }
 0x36c   :  { %v286_v44 = vadd.f32 1e-07, %v285_v43 }
 0x36e   :  { %385 = vlog2.f32 %v286_v44 }
 0x378   :  { %v386_v49 = vpop.eup %385 }
 0x379   :  { %v288_v51 = vmul.f32 0.6931472, %v386_v49 }
 0x37b   :  { %v289_v52 = vsub.f32 %v329_v50, %v288_v51 }
 0x37d   :  { %v292_v53 = vsel %vm290_vm2, %v289_v52, 0.0 }
 0x37e   :  { %293 = vadd.xlane.f32.xlu1 %v292_v53 }
 0x37f   :  { %464 = shalt.err (!%p461_p0)
}
 0x380   :  { %s465_s11 = scalar_lea.hbm %s582_s4, 128 }
 0x381   :  { %p466_p1 = scmp.ne.s32.totalorder %s582_s4, %s465_s11  ;;  %p469_p2 = scmp.lt.u32.totalorder %s465_s11, %s582_s4 }
 0x383   :  { %p471_p3 = pnand %p469_p2, %p466_p1 }
 0x385   :  { %474 = shalt.err (!%p471_p3)
}
 0x386   :  { %306 = dma.vmem_to_hbm [thread:$0]  %s304_s7, 128, %s582_s4, [#allocation4]   ;;  %vm295_vm3 = vcmask 7168  }
 0x40b   :  { %v294_v54 = vpop.xlane.xlu1 %293 }
 0x40c   :  { %296 = vst.msk [vmem:[%s583_s5] sm:$0xff] %vm295_vm3, %v294_v54 }
 0x40d   :  { %479 = dma.done.wait [#allocation4], 128  }
 0x40e   :  { %480 = vsyncadd [#allocation4], 4294967168 }
 0x40f   :  { %314 = vsyncpa [#allocation3], 1 }
 0x410   :  { %315 = vsyncpa [#allocation6], 1 }
 0x411   :  { %316 = vsyncpa [#allocation4], 1 }

</bundles_post_ra>
